<compile_context>
chip_gen: v6e
topology: v6e:2x2x1
jax: 0.10.0
libtpu: 0.0.40
codegen_flags: <defaults>
</compile_context>

<pallas_src>
import jax
import jax.numpy as jnp
from jax import lax
from jax.experimental import pallas as pl
from jax.experimental.pallas import tpu as pltpu

DROPRATE = 0.3
BN_EPS = 1e-5
_KEEP_SCALE = 1.0 / (1.0 - DROPRATE)
_DROP_THRESH = int(DROPRATE * (2 ** 32))      # keep element iff hash bits >= threshold
_VMEM_LIMIT = 48 * 1024 * 1024                # headroom below v7x's 64 MiB physical VMEM


# ---------------------------------------------------------------------------
# BatchNorm batch statistics: tiled per-channel sum / sum-of-squares kernel.
# ---------------------------------------------------------------------------
def _make_stats_kernel(m_rows, tm):
    partial_last = (m_rows % tm) != 0

    def kernel(x_ref, sum_ref, sq_ref):
        i = pl.program_id(0)

        @pl.when(i == 0)
        def _init():
            sum_ref[...] = jnp.zeros_like(sum_ref)
            sq_ref[...] = jnp.zeros_like(sq_ref)

        x = x_ref[...]
        if partial_last:
            rows = i * tm + lax.broadcasted_iota(jnp.int32, x.shape, 0)
            x = jnp.where(rows < m_rows, x, 0.0)
        sum_ref[...] += jnp.sum(x, axis=0, keepdims=True)
        sq_ref[...] += jnp.sum(x * x, axis=0, keepdims=True)

    return kernel


def _channel_stats(x2d):
    m, c = x2d.shape
    tm = m if m <= 256 else 256               # row tile: full M or a multiple of 8
    sums, sqs = pl.pallas_call(
        _make_stats_kernel(m, tm),
        grid=(pl.cdiv(m, tm),),
        in_specs=[pl.BlockSpec((tm, c), lambda i: (i, 0))],
        out_specs=[pl.BlockSpec((1, c), lambda i: (0, 0)),
                   pl.BlockSpec((1, c), lambda i: (0, 0))],
        out_shape=[jax.ShapeDtypeStruct((1, c), jnp.float32),
                   jax.ShapeDtypeStruct((1, c), jnp.float32)],
        compiler_params=pltpu.CompilerParams(
            dimension_semantics=("arbitrary",), vmem_limit_bytes=_VMEM_LIMIT),
    )(x2d)
    return sums, sqs


def _bn_affine(sums, sqs, count, gamma, beta):
    """Fold training-mode BN into a per-channel affine y = a*x + b (tiny glue)."""
    mean = sums / count
    # TODO(synk): single-pass E[x^2]-mean^2; switch to centered partial sums if M grows
    # to the point where f32 cancellation matters.
    var = jnp.maximum(sqs / count - mean * mean, 0.0)
    a = gamma.reshape(1, -1) * lax.rsqrt(var + BN_EPS)
    b = beta.reshape(1, -1) - mean * a
    return a, b


# ---------------------------------------------------------------------------
# Fused 3x3 conv helper: 9 accumulated MXU matmuls on a zero-padded bf16 tile.
# ---------------------------------------------------------------------------
def _subsample(xpv, h0, w0, hout, wout, s):
    """xpv[h0::s, w0::s][:hout, :wout, :] via reshape + static index (no strided slice).
    TODO(synk): a strided pl.ds load may lower more efficiently on real hardware."""
    c = xpv.shape[-1]
    region = xpv[h0:h0 + s * hout, w0:w0 + s * wout, :]
    return region.reshape(hout, s, wout, s, c)[:, 0, :, 0, :]


def _conv3x3_taps(xp_ref, w_ref, hout, wout, stride, cout):
    """3x3 conv (padding already present in xp_ref) as 9 accumulated matmuls.

    xp_ref: zero-padded bf16 VMEM scratch (Hin+2, Win+2, Cin)
    w_ref : bf16 (9, Cin, Cout), tap-major (kh*3+kw)
    Returns f32 (hout*wout, cout).
    """
    cin = xp_ref.shape[-1]
    xpv = xp_ref[...] if stride != 1 else None
    acc = jnp.zeros((hout * wout, cout), jnp.float32)
    for kh in range(3):
        for kw in range(3):
            if stride == 1:
                tap = xp_ref[kh:kh + hout, kw:kw + wout, :]
            else:
                tap = _subsample(xpv, kh, kw, hout, wout, stride)
            acc = acc + jnp.dot(tap.reshape(hout * wout, cin),
                                w_ref[kh * 3 + kw],
                                preferred_element_type=jnp.float32)
    return acc


# ---------------------------------------------------------------------------
# Pass A: x_out = relu(bn1(x)); h_pre = conv1(x_out); res = conv_res(x_out).
# ---------------------------------------------------------------------------
def _make_pass_a_kernel(h, w, cin, cout, hout, wout, stride, with_res):
    def kernel(*refs):
        if with_res:
            x_ref, a1_ref, b1_ref, w1_ref, wres_ref, hpre_ref, res_ref, xp_ref = refs
        else:
            x_ref, a1_ref, b1_ref, w1_ref, hpre_ref, xp_ref = refs

        # relu(bn1(x)) with BN folded into a per-channel affine, all f32.
        x_out = jnp.maximum(x_ref[0] * a1_ref[...] + b1_ref[...], 0.0)

        # Zero-padded bf16 tile: conv halo handled in VMEM, bf16 MXU operands.
        xp_ref[...] = jnp.zeros_like(xp_ref)
        xp_ref[1:h + 1, 1:w + 1, :] = x_out.astype(jnp.bfloat16)

        # conv1: 3x3, stride, padding=1.
        acc = _conv3x3_taps(xp_ref, w1_ref, hout, wout, stride, cout)
        hpre_ref[0] = acc.reshape(hout, wout, cout)

        if with_res:
            # conv_res: 1x1, stride, padding=0, applied to x_out.
            if stride == 1:
                xr = xp_ref[1:h + 1, 1:w + 1, :]
            else:
                xr = _subsample(xp_ref[...], 1, 1, hout, wout, stride)
            res = jnp.dot(xr.reshape(hout * wout, cin), wres_ref[...],
                          preferred_element_type=jnp.float32)
            res_ref[0] = res.reshape(hout, wout, cout)

    return kernel


def _pass_a(x, a1, b1, w1t, wres, stride, hout, wout):
    n, h, w, cin = x.shape
    cout = w1t.shape[-1]
    with_res = wres is not None

    in_specs = [
        pl.BlockSpec((1, h, w, cin), lambda i: (i, 0, 0, 0)),
        pl.BlockSpec((1, cin), lambda i: (0, 0)),
        pl.BlockSpec((1, cin), lambda i: (0, 0)),
        # Constant-index weight block: stays resident in VMEM across the batch grid.
        pl.BlockSpec((9, cin, cout), lambda i: (0, 0, 0)),
    ]
    args = [x, a1, b1, w1t]
    out_shape = [jax.ShapeDtypeStruct((n, hout, wout, cout), jnp.float32)]
    out_specs = [pl.BlockSpec((1, hout, wout, cout), lambda i: (i, 0, 0, 0))]
    if with_res:
        in_specs.append(pl.BlockSpec((cin, cout), lambda i: (0, 0)))
        args.append(wres)
        out_shape.append(jax.ShapeDtypeStruct((n, hout, wout, cout), jnp.float32))
        out_specs.append(pl.BlockSpec((1, hout, wout, cout), lambda i: (i, 0, 0, 0)))

    outs = pl.pallas_call(
        _make_pass_a_kernel(h, w, cin, cout, hout, wout, stride, with_res),
        grid=(n,),
        in_specs=in_specs,
        out_specs=out_specs,
        out_shape=out_shape,
        scratch_shapes=[pltpu.VMEM((h + 2, w + 2, cin), jnp.bfloat16)],
        compiler_params=pltpu.CompilerParams(
            dimension_semantics=("parallel",), vmem_limit_bytes=_VMEM_LIMIT),
    )(*args)
    if with_res:
        return outs[0], outs[1]
    return outs[0], None


# ---------------------------------------------------------------------------
# Pass B: out = conv2(dropout(relu(bn2(h_pre)))) + residual.
# ---------------------------------------------------------------------------
def _dropout_keep(shape, seed_u, offset_u):
    """Counter-based hash PRNG; keep w.p. (1 - DROPRATE) via bits >= uint32 threshold."""
    r = lax.broadcasted_iota(jnp.int32, shape, 0).astype(jnp.uint32)
    c = lax.broadcasted_iota(jnp.int32, shape, 1).astype(jnp.uint32)
    bits = r * jnp.uint32(shape[1]) + c + offset_u
    bits = bits ^ (seed_u * jnp.uint32(0x9E3779B9))
    bits = (bits ^ (bits >> 16)) * jnp.uint32(0x7FEB352D)
    bits = (bits ^ (bits >> 15)) * jnp.uint32(0x846CA68B)
    bits = bits ^ (bits >> 16)
    return bits >= jnp.uint32(_DROP_THRESH)


def _make_pass_b_kernel(hout, wout, cout):
    def kernel(seed_ref, h_ref, r_ref, a2_ref, b2_ref, w2_ref, o_ref, hp_ref):
        # relu(bn2(conv1_out)), BN folded into affine, f32 math.
        y = jnp.maximum(h_ref[0] * a2_ref[...] + b2_ref[...], 0.0)
        y2 = y.reshape(hout * wout, cout)

        # Dropout (training mode): per-image offset + SMEM seed -> unique mask per tile.
        # TODO(synk): RNG stream differs from torch.nn.Dropout (no bitwise match possible).
        seed_u = seed_ref[0].astype(jnp.uint32)
        offset_u = pl.program_id(0).astype(jnp.uint32) * jnp.uint32(hout * wout * cout)
        keep = _dropout_keep((hout * wout, cout), seed_u, offset_u)
        y2 = jnp.where(keep, y2 * jnp.float32(_KEEP_SCALE), 0.0)

        # conv2: 3x3, stride 1, padding 1, on a zero-padded bf16 tile.
        hp_ref[...] = jnp.zeros_like(hp_ref)
        hp_ref[1:hout + 1, 1:wout + 1, :] = y2.reshape(hout, wout, cout).astype(jnp.bfloat16)
        acc = _conv3x3_taps(hp_ref, w2_ref, hout, wout, 1, cout)

        # Residual add (identity x, or conv_res(x_out) computed in pass A).
        o_ref[0] = acc.reshape(hout, wout, cout) + r_ref[0]

    return kernel


def _pass_b(h_pre, residual, a2, b2, w2t, seed):
    n, hout, wout, cout = h_pre.shape
    seed_arr = jnp.asarray([seed], dtype=jnp.int32)
    return pl.pallas_call(
        _make_pass_b_kernel(hout, wout, cout),
        grid=(n,),
        in_specs=[
            pl.BlockSpec(memory_space=pltpu.MemorySpace.SMEM),            # seed scalar
            pl.BlockSpec((1, hout, wout, cout), lambda i: (i, 0, 0, 0)),  # h_pre
            pl.BlockSpec((1, hout, wout, cout), lambda i: (i, 0, 0, 0)),  # residual
            pl.BlockSpec((1, cout), lambda i: (0, 0)),                    # a2
            pl.BlockSpec((1, cout), lambda i: (0, 0)),                    # b2
            pl.BlockSpec((9, cout, cout), lambda i: (0, 0, 0)),           # w2 (resident)
        ],
        out_specs=pl.BlockSpec((1, hout, wout, cout), lambda i: (i, 0, 0, 0)),
        out_shape=jax.ShapeDtypeStruct((n, hout, wout, cout), jnp.float32),
        scratch_shapes=[pltpu.VMEM((hout + 2, wout + 2, cout), jnp.bfloat16)],
        compiler_params=pltpu.CompilerParams(
            dimension_semantics=("parallel",), vmem_limit_bytes=_VMEM_LIMIT),
    )(seed_arr, h_pre, residual, a2, b2, w2t)


# ------------------------------- JAX glue -----------------------------------
def _w3x3_to_taps(w):
    """(Cout, Cin, 3, 3) -> bf16 (9, Cin, Cout), tap-major (kh*3+kw)."""
    cout, cin = w.shape[0], w.shape[1]
    return jnp.transpose(w, (2, 3, 1, 0)).reshape(9, cin, cout).astype(jnp.bfloat16)


def basic_block_forward(x_nchw, params, stride, seed=0):
    """Pallas implementation of BasicBlock.forward (use_bn=True, droprate=0.3)."""
    n, cin, h, w = x_nchw.shape
    cout = params["w1"].shape[0]
    equal_in_out = (cin == cout)
    assert stride in (1, 2)
    if equal_in_out:
        assert stride == 1, "identity-residual blocks require stride 1"
    if stride == 2:
        assert h % 2 == 0 and w % 2 == 0

    hout = (h - 1) // stride + 1
    wout = (w - 1) // stride + 1

    # TODO(synk): NCHW<->NHWC boundary transposes could be dropped if the caller keeps NHWC.
    x = jnp.transpose(x_nchw, (0, 2, 3, 1)).astype(jnp.float32)       # NHWC

    # bn1 batch statistics -> per-channel affine (training mode).
    s1, q1 = _channel_stats(x.reshape(n * h * w, cin))
    a1, b1 = _bn_affine(s1, q1, float(n * h * w), params["gamma1"], params["beta1"])

    w1t = _w3x3_to_taps(params["w1"])
    wres = None
    if not equal_in_out:
        wres = params["w_res"][:, :, 0, 0].T.astype(jnp.bfloat16)     # (Cin, Cout)

    # Pass A: x_out = relu(bn1(x)); h_pre = conv1(x_out); res = conv_res(x_out).
    h_pre, res = _pass_a(x, a1, b1, w1t, wres, stride, hout, wout)

    # bn2 batch statistics over conv1 output (one unavoidable HBM round trip of h_pre).
    s2, q2 = _channel_stats(h_pre.reshape(n * hout * wout, cout))
    a2, b2 = _bn_affine(s2, q2, float(n * hout * wout), params["gamma2"], params["beta2"])

    # Pass B: out = conv2(dropout(relu(bn2(h_pre)))) + residual.
    residual = x if equal_in_out else res
    w2t = _w3x3_to_taps(params["w2"])
    out = _pass_b(h_pre, residual, a2, b2, w2t, seed)

    return jnp.transpose(out, (0, 3, 1, 2))                           # back to NCHW


def make_params(key, in_planes, out_planes):
    """Deterministic synthetic parameters with the shapes implied by __init__."""
    k1, k2, k3 = jax.random.split(key, 3)
    return {
        "gamma1": 1.0 + 0.10 * jnp.arange(in_planes, dtype=jnp.float32),
        "beta1": 0.01 * jnp.arange(in_planes, dtype=jnp.float32),
        "gamma2": 1.0 + 0.05 * jnp.arange(out_planes, dtype=jnp.float32),
        "beta2": -0.02 * jnp.arange(out_planes, dtype=jnp.float32),
        "w1": 0.1 * jax.random.normal(k1, (out_planes, in_planes, 3, 3), jnp.float32),
        "w2": 0.1 * jax.random.normal(k2, (out_planes, out_planes, 3, 3), jnp.float32),
        "w_res": (0.1 * jax.random.normal(k3, (out_planes, in_planes, 1, 1), jnp.float32)
                  if in_planes != out_planes else None),
    }


if __name__ == "__main__":
    key = jax.random.PRNGKey(0)
    kx, kp, kx2, kp2 = jax.random.split(key, 4)

    # Case 1: projection residual (in_planes != out_planes, stride 2)
    N, Cin, H, W = 2, 4, 16, 16
    Cout, stride = 8, 2
    x = jax.random.normal(kx, (N, Cin, H, W), jnp.float32)
    params = make_params(kp, Cin, Cout)
    out = jax.block_until_ready(basic_block_forward(x, params, stride, seed=123))
    assert out.shape == (N, Cout, H // stride, W // stride), out.shape
    assert jnp.all(jnp.isfinite(out))

    # Case 2: identity residual (in_planes == out_planes, stride 1)
    C = 8
    x2 = jax.random.normal(kx2, (N, C, H, W), jnp.float32)
    params2 = make_params(kp2, C, C)
    out2 = jax.block_until_ready(basic_block_forward(x2, params2, 1, seed=7))
    assert out2.shape == (N, C, H, W), out2.shape
    assert jnp.all(jnp.isfinite(out2))

    print("KERNEL_OK")
</pallas_src>

<mosaic_0001>
module attributes {stable_mosaic.version = 11 : i64} {
  func.func @kernel(%arg0: i32, %arg1: memref<256x4xf32, #tpu.memory_space<vmem>>, %arg2: memref<1x4xf32, #tpu.memory_space<vmem>>, %arg3: memref<1x4xf32, #tpu.memory_space<vmem>>) attributes {dimension_semantics = [#tpu.dimension_semantics<arbitrary>], iteration_bounds = array<i64: 2>, scalar_prefetch = 0 : i64, scratch_operands = 0 : i64, tpu.core_type = #tpu.core_type<tc>, window_params = [{transform_indices = @transform_0, window_bounds = array<i64: 256, 4>}, {pipeline_mode = #tpu.pipeline_mode<synchronous>, transform_indices = @transform_1, window_bounds = array<i64: 1, 4>}, {pipeline_mode = #tpu.pipeline_mode<synchronous>, transform_indices = @transform_2, window_bounds = array<i64: 1, 4>}]} {
    %c0_i32 = arith.constant 0 : i32
    %0 = arith.cmpi eq, %arg0, %c0_i32 : i32
    %1 = arith.extui %0 : i1 to i32
    %c0_i32_0 = arith.constant 0 : i32
    %2 = arith.cmpi ne, %1, %c0_i32_0 : i32
    scf.if %2 {
      %cst_11 = arith.constant 0.000000e+00 : f32
      %15 = vector.broadcast %cst_11 : f32 to vector<1x4xf32>
      %c0_12 = arith.constant 0 : index
      %c0_13 = arith.constant 0 : index
      %16 = vector.load %arg2[%c0_12, %c0_13] : memref<1x4xf32, #tpu.memory_space<vmem>>, vector<1x4xf32>
      tpu.vector_store %arg2[%c0_12, %c0_13], %15 {strides = array<i32>} : memref<1x4xf32, #tpu.memory_space<vmem>>, vector<1x4xf32>,
      %cst_14 = arith.constant 0.000000e+00 : f32
      %17 = vector.broadcast %cst_14 : f32 to vector<1x4xf32>
      %c0_15 = arith.constant 0 : index
      %c0_16 = arith.constant 0 : index
      %18 = vector.load %arg3[%c0_15, %c0_16] : memref<1x4xf32, #tpu.memory_space<vmem>>, vector<1x4xf32>
      tpu.vector_store %arg3[%c0_15, %c0_16], %17 {strides = array<i32>} : memref<1x4xf32, #tpu.memory_space<vmem>>, vector<1x4xf32>,
    } else {
    }
    %c0 = arith.constant 0 : index
    %c0_1 = arith.constant 0 : index
    %3 = vector.load %arg1[%c0, %c0_1] : memref<256x4xf32, #tpu.memory_space<vmem>>, vector<256x4xf32>
    %c0_2 = arith.constant 0 : index
    %c0_3 = arith.constant 0 : index
    %4 = vector.load %arg2[%c0_2, %c0_3] : memref<1x4xf32, #tpu.memory_space<vmem>>, vector<1x4xf32>
    %cst = arith.constant dense<0.000000e+00> : vector<4xf32>
    %5 = vector.multi_reduction <add>, %3, %cst [0] : vector<256x4xf32> to vector<4xf32>
    %6 = vector.shape_cast %5 : vector<4xf32> to vector<1x4xf32>
    %7 = arith.addf %4, %6 : vector<1x4xf32>
    %c0_4 = arith.constant 0 : index
    %c0_5 = arith.constant 0 : index
    %8 = vector.load %arg2[%c0_4, %c0_5] : memref<1x4xf32, #tpu.memory_space<vmem>>, vector<1x4xf32>
    tpu.vector_store %arg2[%c0_4, %c0_5], %7 {strides = array<i32>} : memref<1x4xf32, #tpu.memory_space<vmem>>, vector<1x4xf32>,
    %c0_6 = arith.constant 0 : index
    %c0_7 = arith.constant 0 : index
    %9 = vector.load %arg3[%c0_6, %c0_7] : memref<1x4xf32, #tpu.memory_space<vmem>>, vector<1x4xf32>
    %10 = arith.mulf %3, %3 : vector<256x4xf32>
    %cst_8 = arith.constant dense<0.000000e+00> : vector<4xf32>
    %11 = vector.multi_reduction <add>, %10, %cst_8 [0] : vector<256x4xf32> to vector<4xf32>
    %12 = vector.shape_cast %11 : vector<4xf32> to vector<1x4xf32>
    %13 = arith.addf %9, %12 : vector<1x4xf32>
    %c0_9 = arith.constant 0 : index
    %c0_10 = arith.constant 0 : index
    %14 = vector.load %arg3[%c0_9, %c0_10] : memref<1x4xf32, #tpu.memory_space<vmem>>, vector<1x4xf32>
    tpu.vector_store %arg3[%c0_9, %c0_10], %13 {strides = array<i32>} : memref<1x4xf32, #tpu.memory_space<vmem>>, vector<1x4xf32>,
    return
  }
  func.func @transform_0(%arg0: i32) -> (i32, i32) {
    %c0_i32 = arith.constant 0 : i32
    %c0_i32_0 = arith.constant 0 : i32
    return %arg0, %c0_i32 : i32, i32
  }
  func.func @transform_1(%arg0: i32) -> (i32, i32) {
    %c0_i32 = arith.constant 0 : i32
    %c0_i32_0 = arith.constant 0 : i32
    %c0_i32_1 = arith.constant 0 : i32
    return %c0_i32, %c0_i32_0 : i32, i32
  }
  func.func @transform_2(%arg0: i32) -> (i32, i32) {
    %c0_i32 = arith.constant 0 : i32
    %c0_i32_0 = arith.constant 0 : i32
    %c0_i32_1 = arith.constant 0 : i32
    return %c0_i32, %c0_i32_0 : i32, i32
  }
}

</mosaic_0001>

<bundles_post_ra>
// kernel: tpu_custom_call.1
= control target key start
LH: loop header
LB: loop body
LE: loop exit
PB: predicated region body
PF: predicated region fallthrough
CT: control target
= control target key end

     0   :  { %8 = vsyncpa [#allocation3], 0  ;;  %s675_s0 = inlined_call_operand.vmem [shape: f32[512,4], index: 0, kind: input, shape index: {}]   ;;  %s676_s1 = inlined_call_operand.hbm [shape: f32[1,4], index: 1, kind: output, shape index: {0}]   ;;  %s677_s2 = inlined_call_operand.hbm [shape: f32[1,4], index: 2, kind: output, shape index: {1}]  }
   0x1   :  { %9 = vsyncpa [#allocation5], 0  ;;  %s534_s9 = smov 0  }
   0x2 LB: > { %s540_s10 = sadd.s32 4294967295, %s514_s9   ;;  %p419_p0 = scmp.ge.s32.totalorder %s514_s9, 1  ;;  %s514_s9 = sphi %s534_s9, %s15_s9  }
   0x3   : > { %p108_p1 = scmp.lt.s32.totalorder %s514_s9, 3 }
   0x5   : > { %p109_p2 = pnand %p419_p0, %p108_p1 }
   0x6   : > { %s420_s11 = sshll.u32 (!%p109_p2), %s540_s10, 5  ;;  %p422_p4 = scmp.ne.s32.totalorder (!%p109_p2), %s540_s10, 0 }
   0x7   : > { %112 = sbr.rel (%p109_p2) target bundleno = 122 (0x7a), region = 24  ;;  %p126_p3 = scmp.lt.s32.totalorder (!%p109_p2), %s420_s11, 63 }
   0xc   : > { %s679_s11 = smov (!%p126_p3, %s420_s11), 63  ;;  %134 = sbr.rel (%p422_p4) target bundleno = 19 (0x13), region = 28 }
   0xd   : > { %s421_s12 = sshll.u32 %s679_s11, 3 }
   0xe   : > { %s548_s15 = scalar_lea.vmem %s675_s0, %s421_s12 }
  0x11   : > { %vm135_vm0 = vcmask 24576   ;;  %v516_v0 = vmov 0.0  }
  0x12   : > { %136 = vst.msk [vmem:[#allocation2] sm:$0x1] %vm135_vm0, %v516_v0  ;;  %137 = vst.msk [vmem:[#allocation4] sm:$0x1] %vm135_vm0, %v516_v0 }
  0x13 PF: > { %v138_v1 = vld [vmem:[%s548_s15] sm:$0xff]  ;;  %v139_v2 = vld [vmem:[%s548_s15 + $0x8] sm:$0xff]  ;;  %v140_v3 = vld [vmem:[%s548_s15 + $0x10] sm:$0xff]  ;;  %vm171_vm1 = vcmask 31744   ;;  %s517_s16 = smov [#allocation2]   ;;  %vm242_vm2 = vcmask 24576  }
  0x14   : > { %v172_v4 = vsel %vm171_vm1, %v138_v1, 0.0  ;;  %v173_v5 = vsel %vm171_vm1, %v139_v2, 0.0  ;;  %v175_v6 = vsel %vm171_vm1, %v140_v3, 0.0  ;;  %v141_v7 = vld [vmem:[%s548_s15 + $0x18] sm:$0xff]  ;;  %v142_v10 = vld [vmem:[%s548_s15 + $0x20] sm:$0xff]  ;;  %v143_v13 = vld [vmem:[%s548_s15 + $0x28] sm:$0xff]  ;;  %v245_v28 = vmul.f32 %v138_v1, %v138_v1 }
  0x15   : > { %v174_v8 = vadd.f32 %v173_v5, %v172_v4  ;;  %v177_v9 = vsel %vm171_vm1, %v141_v7, 0.0  ;;  %v179_v12 = vsel %vm171_vm1, %v142_v10, 0.0  ;;  %v181_v15 = vsel %vm171_vm1, %v143_v13, 0.0  ;;  %v144_v16 = vld [vmem:[%s548_s15 + $0x30] sm:$0xff]  ;;  %v145_v19 = vld [vmem:[%s548_s15 + $0x38] sm:$0xff]  ;;  %v146_v22 = vld [vmem:[%s548_s15 + $0x40] sm:$0xff] }
  0x16   : > { %v183_v18 = vsel %vm171_vm1, %v144_v16, 0.0  ;;  %v185_v21 = vsel %vm171_vm1, %v145_v19, 0.0  ;;  %v187_v24 = vsel %vm171_vm1, %v146_v22, 0.0  ;;  %v147_v25 = vld [vmem:[%s548_s15 + $0x48] sm:$0xff]  ;;  %v246_v29 = vmul.f32 %v139_v2, %v139_v2  ;;  %v148_v31 = vld [vmem:[%s548_s15 + $0x50] sm:$0xff]  ;;  %v149_v33 = vld [vmem:[%s548_s15 + $0x58] sm:$0xff] }
  0x17   : > { %v176_v11 = vadd.f32 %v175_v6, %v174_v8  ;;  %v189_v27 = vsel %vm171_vm1, %v147_v25, 0.0  ;;  %v247_v30 = vmul.f32 %v140_v3, %v140_v3  ;;  %v191_v34 = vsel %vm171_vm1, %v148_v31, 0.0  ;;  %v150_v42 = vld [vmem:[%s548_s15 + $0x60] sm:$0xff]  ;;  %v151_v48 = vld [vmem:[%s548_s15 + $0x68] sm:$0xff]  ;;  %v152_v54 = vld [vmem:[%s548_s15 + $0x70] sm:$0xff]  ;;  %s355_s17 = sshll.u32 %s517_s16, 4  ;;  %s356_s17 = int_to_ptr.vmem [resolvable:$true] %s355_s17 }
  0x18   : > { %v248_v35 = vmul.f32 %v141_v7, %v141_v7  ;;  %v193_v37 = vsel %vm171_vm1, %v149_v33, 0.0  ;;  %v249_v38 = vmul.f32 %v142_v10, %v142_v10  ;;  %v277_v39 = vsel %vm171_vm1, %v245_v28, 0.0  ;;  %v153_v60 = vld [vmem:[%s548_s15 + $0x78] sm:$0xff]  ;;  %v154_v2 = vld [vmem:[%s548_s15 + $0x80] sm:$0xff]  ;;  %v155_v8 = vld [vmem:[%s548_s15 + $0x88] sm:$0xff]  ;;  %p437_p5 = scmp.eq.s32.totalorder %s540_s10, 1  ;;  %p459_p9 = scmp.lt.s32.totalorder %s356_s17, %s356_s17 }
  0x19   : > { %v178_v14 = vadd.f32 %v177_v9, %v176_v11  ;;  %v278_v40 = vsel %vm171_vm1, %v246_v29, 0.0  ;;  %v280_v41 = vsel %vm171_vm1, %v247_v30, 0.0  ;;  %v195_v45 = vsel %vm171_vm1, %v150_v42, 0.0  ;;  %s452_s18 = scalar_lea.vmem %s356_s17, 16  ;;  %s458_s19 = scalar_lea.vmem %s356_s17, 32 }
  0x1a   : > { %v279_v44 = vadd.f32 %v278_v40, %v277_v39  ;;  %v250_v46 = vmul.f32 %v143_v13, %v143_v13  ;;  %v282_v47 = vsel %vm171_vm1, %v248_v35, 0.0  ;;  %v197_v51 = vsel %vm171_vm1, %v151_v48, 0.0  ;;  %p453_p6 = scmp.ne.s32.totalorder %s356_s17, %s452_s18  ;;  %p460_p10 = scmp.lt.s32.totalorder %s458_s19, %s452_s18 }
  0x1b   : > { %v180_v17 = vadd.f32 %v179_v12, %v178_v14  ;;  %v251_v52 = vmul.f32 %v144_v16, %v144_v16  ;;  %v284_v53 = vsel %vm171_vm1, %v249_v38, 0.0  ;;  %v199_v57 = vsel %vm171_vm1, %v152_v54, 0.0  ;;  %v156_v14 = vld [vmem:[%s548_s15 + $0x90] sm:$0xff] }
  0x1c   : > { %v281_v50 = vadd.f32 %v280_v41, %v279_v44  ;;  %v252_v58 = vmul.f32 %v145_v19, %v145_v19  ;;  %v286_v59 = vsel %vm171_vm1, %v250_v46, 0.0  ;;  %v201_v63 = vsel %vm171_vm1, %v153_v60, 0.0  ;;  %v160_v38 = vld [vmem:[%s548_s15 + $0xb0] sm:$0xff]  ;;  %v161_v44 = vld [vmem:[%s548_s15 + $0xb8] sm:$0xff]  ;;  %p454_p7 = pnand %p453_p6, %p437_p5  ;;  %p461_p11 = por %p460_p10, %p459_p9 }
  0x1d   : > { %v182_v20 = vadd.f32 %v181_v15, %v180_v17  ;;  %v253_v0 = vmul.f32 %v146_v22, %v146_v22  ;;  %v288_v1 = vsel %vm171_vm1, %v251_v52, 0.0  ;;  %v203_v5 = vsel %vm171_vm1, %v154_v2, 0.0 }
  0x1e   : > { %v283_v56 = vadd.f32 %v282_v47, %v281_v50  ;;  %v254_v6 = vmul.f32 %v147_v25, %v147_v25  ;;  %v290_v7 = vsel %vm171_vm1, %v252_v58, 0.0  ;;  %v205_v11 = vsel %vm171_vm1, %v155_v8, 0.0  ;;  %v162_v50 = vld [vmem:[%s548_s15 + $0xc0] sm:$0xff]  ;;  %p455_p8 = pneg %p454_p7 }
  0x1f   : > { %v184_v23 = vadd.f32 %v183_v18, %v182_v20  ;;  %v255_v12 = vmul.f32 %v148_v31, %v148_v31  ;;  %v292_v13 = vsel %vm171_vm1, %v253_v0, 0.0  ;;  %v207_v17 = vsel %vm171_vm1, %v156_v14, 0.0  ;;  %v157_v20 = vld [vmem:[%s548_s15 + $0x98] sm:$0xff] }
  0x20   : > { %v285_v62 = vadd.f32 %v284_v53, %v283_v56  ;;  %v256_v18 = vmul.f32 %v149_v33, %v149_v33  ;;  %v294_v19 = vsel %vm171_vm1, %v254_v6, 0.0  ;;  %v258_v30 = vmul.f32 %v151_v48, %v151_v48  ;;  %v163_v56 = vld [vmem:[%s548_s15 + $0xc8] sm:$0xff]  ;;  %p462_p12 = pnand %p461_p11, %p455_p8 }
  0x21   : > { %v186_v26 = vadd.f32 %v185_v21, %v184_v23  ;;  %v209_v23 = vsel %vm171_vm1, %v157_v20, 0.0  ;;  %v296_v25 = vsel %vm171_vm1, %v255_v12, 0.0  ;;  %v215_v41 = vsel %vm171_vm1, %v160_v38, 0.0 }
  0x22   : > { %v287_v4 = vadd.f32 %v286_v59, %v285_v62  ;;  %v298_v31 = vsel %vm171_vm1, %v256_v18, 0.0  ;;  %v217_v47 = vsel %vm171_vm1, %v161_v44, 0.0  ;;  %v261_v48 = vmul.f32 %v154_v2, %v154_v2  ;;  %v164_v62 = vld [vmem:[%s548_s15 + $0xd0] sm:$0xff] }
  0x23   : > { %v188_v32 = vadd.f32 %v187_v24, %v186_v26  ;;  %v257_v24 = vmul.f32 %v150_v42, %v150_v42  ;;  %v158_v26 = vld [vmem:[%s548_s15 + $0xa0] sm:$0xff]  ;;  %v260_v42 = vmul.f32 %v153_v60, %v153_v60  ;;  %v219_v53 = vsel %vm171_vm1, %v162_v50, 0.0 }
  0x24   : > { %v289_v10 = vadd.f32 %v288_v1, %v287_v4  ;;  %v211_v29 = vsel %vm171_vm1, %v158_v26, 0.0  ;;  %v221_v59 = vsel %vm171_vm1, %v163_v56, 0.0  ;;  %v263_v60 = vmul.f32 %v156_v14, %v156_v14  ;;  %v165_v4 = vld [vmem:[%s548_s15 + $0xd8] sm:$0xff] }
  0x25   : > { %v190_v36 = vadd.f32 %v189_v27, %v188_v32  ;;  %v159_v32 = vld [vmem:[%s548_s15 + $0xa8] sm:$0xff]  ;;  %v223_v1 = vsel %vm171_vm1, %v164_v62, 0.0  ;;  %v264_v2 = vmul.f32 %v157_v20, %v157_v20  ;;  %v267_v20 = vmul.f32 %v160_v38, %v160_v38 }
  0x26   : > { %v291_v16 = vadd.f32 %v290_v7, %v289_v10  ;;  %v213_v35 = vsel %vm171_vm1, %v159_v32, 0.0  ;;  %v225_v7 = vsel %vm171_vm1, %v165_v4, 0.0  ;;  %v166_v10 = vld [vmem:[%s548_s15 + $0xe0] sm:$0xff]  ;;  %v266_v14 = vmul.f32 %v159_v32, %v159_v32 }
  0x27   : > { %v192_v43 = vadd.f32 %v191_v34, %v190_v36  ;;  %v259_v36 = vmul.f32 %v152_v54, %v152_v54  ;;  %v262_v54 = vmul.f32 %v155_v8, %v155_v8  ;;  %v265_v8 = vmul.f32 %v158_v26, %v158_v26 }
  0x28   : > { %v293_v22 = vadd.f32 %v292_v13, %v291_v16  ;;  %v227_v13 = vsel %vm171_vm1, %v166_v10, 0.0  ;;  %v167_v16 = vld [vmem:[%s548_s15 + $0xe8] sm:$0xff]  ;;  %v268_v26 = vmul.f32 %v161_v44, %v161_v44  ;;  %v269_v32 = vmul.f32 %v162_v50, %v162_v50 }
  0x29   : > { %v194_v49 = vadd.f32 %v193_v37, %v192_v43  ;;  %v300_v37 = vsel %vm171_vm1, %v257_v24, 0.0  ;;  %v302_v43 = vsel %vm171_vm1, %v258_v30, 0.0  ;;  %v272_v44 = vmul.f32 %v165_v4, %v165_v4 }
  0x2a   : > { %v295_v28 = vadd.f32 %v294_v19, %v293_v22  ;;  %v229_v19 = vsel %vm171_vm1, %v167_v16, 0.0  ;;  %v168_v22 = vld [vmem:[%s548_s15 + $0xf0] sm:$0xff] }
  0x2b   : > { %v196_v55 = vadd.f32 %v195_v45, %v194_v49  ;;  %v304_v49 = vsel %vm171_vm1, %v259_v36, 0.0  ;;  %v270_v36 = vmul.f32 %v163_v56, %v163_v56  ;;  %v275_v56 = vmul.f32 %v168_v22, %v168_v22 }
  0x2c   : > { %v297_v34 = vadd.f32 %v296_v25, %v295_v28  ;;  %v231_v25 = vsel %vm171_vm1, %v168_v22, 0.0  ;;  %v169_v28 = vld [vmem:[%s548_s15 + $0xf8] sm:$0xff] }
  0x2d   : > { %v198_v61 = vadd.f32 %v197_v51, %v196_v55  ;;  %v306_v55 = vsel %vm171_vm1, %v260_v42, 0.0 }
  0x2e   : > { %v299_v40 = vadd.f32 %v298_v31, %v297_v34  ;;  %v233_v31 = vsel %vm171_vm1, %v169_v28, 0.0 }
  0x2f   : > { %v200_v3 = vadd.f32 %v199_v57, %v198_v61  ;;  %v308_v61 = vsel %vm171_vm1, %v261_v48, 0.0  ;;  %v273_v48 = vmul.f32 %v166_v10, %v166_v10 }
  0x30   : > { %v301_v46 = vadd.f32 %v300_v37, %v299_v40  ;;  %v322_v37 = vsel %vm171_vm1, %v268_v26, 0.0  ;;  %v271_v40 = vmul.f32 %v164_v62, %v164_v62 }
  0x31   : > { %v202_v9 = vadd.f32 %v201_v63, %v200_v3  ;;  %v310_v3 = vsel %vm171_vm1, %v262_v54, 0.0 }
  0x32   : > { %v303_v52 = vadd.f32 %v302_v43, %v301_v46 }
  0x33   : > { %v204_v15 = vadd.f32 %v203_v5, %v202_v9  ;;  %v312_v9 = vsel %vm171_vm1, %v263_v60, 0.0  ;;  %v170_v60 = vld [vmem:[#allocation2] sm:$0x1] }
  0x34   : > { %v305_v58 = vadd.f32 %v304_v49, %v303_v52  ;;  %v328_v49 = vsel %vm171_vm1, %v271_v40, 0.0  ;;  %v274_v52 = vmul.f32 %v167_v16, %v167_v16 }
  0x35   : > { %v206_v21 = vadd.f32 %v205_v11, %v204_v15  ;;  %v314_v15 = vsel %vm171_vm1, %v264_v2, 0.0 }
  0x36   : > { %v307_v0 = vadd.f32 %v306_v55, %v305_v58  ;;  %v334_v62 = vsel %vm171_vm1, %v274_v52, 0.0 }
  0x37   : > { %v208_v27 = vadd.f32 %v207_v17, %v206_v21  ;;  %v316_v21 = vsel %vm171_vm1, %v265_v8, 0.0 }
  0x38   : > { %v309_v6 = vadd.f32 %v308_v61, %v307_v0  ;;  %v276_v61 = vmul.f32 %v169_v28, %v169_v28 }
  0x39   : > { %v210_v33 = vadd.f32 %v209_v23, %v208_v27  ;;  %v318_v27 = vsel %vm171_vm1, %v266_v14, 0.0 }
  0x3a   : > { %v311_v12 = vadd.f32 %v310_v3, %v309_v6  ;;  %v338_v4 = vsel %vm171_vm1, %v276_v61, 0.0 }
  0x3b   : > { %v212_v39 = vadd.f32 %v211_v29, %v210_v33  ;;  %v320_v33 = vsel %vm171_vm1, %v267_v20, 0.0 }
  0x3c   : > { %v313_v18 = vadd.f32 %v312_v9, %v311_v12 }
  0x3d   : > { %v214_v45 = vadd.f32 %v213_v35, %v212_v39 }
  0x3e   : > { %v315_v24 = vadd.f32 %v314_v15, %v313_v18 }
  0x3f   : > { %v216_v51 = vadd.f32 %v215_v41, %v214_v45  ;;  %v324_v41 = vsel %vm171_vm1, %v269_v32, 0.0  ;;  %v326_v45 = vsel %vm171_vm1, %v270_v36, 0.0 }
  0x40   : > { %v317_v30 = vadd.f32 %v316_v21, %v315_v24 }
  0x41   : > { %v218_v57 = vadd.f32 %v217_v47, %v216_v51 }
  0x42   : > { %v319_v35 = vadd.f32 %v318_v27, %v317_v30 }
  0x43   : > { %v220_v63 = vadd.f32 %v219_v53, %v218_v57  ;;  %v330_v53 = vsel %vm171_vm1, %v272_v44, 0.0  ;;  %v332_v57 = vsel %vm171_vm1, %v273_v48, 0.0 }
  0x44   : > { %v321_v39 = vadd.f32 %v320_v33, %v319_v35 }
  0x45   : > { %v222_v5 = vadd.f32 %v221_v59, %v220_v63 }
  0x46   : > { %v323_v43 = vadd.f32 %v322_v37, %v321_v39 }
  0x47   : > { %v224_v11 = vadd.f32 %v223_v1, %v222_v5  ;;  %v336_v1 = vsel %vm171_vm1, %v275_v56, 0.0 }
  0x48   : > { %v325_v47 = vadd.f32 %v324_v41, %v323_v43 }
  0x49   : > { %v226_v17 = vadd.f32 %v225_v7, %v224_v11 }
  0x4a   : > { %v327_v51 = vadd.f32 %v326_v45, %v325_v47 }
  0x4b   : > { %v228_v23 = vadd.f32 %v227_v13, %v226_v17 }
  0x4c   : > { %v329_v55 = vadd.f32 %v328_v49, %v327_v51 }
  0x4d   : > { %v230_v29 = vadd.f32 %v229_v19, %v228_v23 }
  0x4e   : > { %v331_v59 = vadd.f32 %v330_v53, %v329_v55 }
  0x4f   : > { %v232_v34 = vadd.f32 %v231_v25, %v230_v29 }
  0x50   : > { %v333_v0 = vadd.f32 %v332_v57, %v331_v59 }
  0x51   : > { %v234_v38 = vadd.f32 %v233_v31, %v232_v34 }
  0x52   : > { %v335_v3 = vadd.f32 %v334_v62, %v333_v0 }
  0x53   : > { %v235_v42 = vrot.slane %v234_v38, 4 }
  0x54   : > { %v337_v5 = vadd.f32 %v336_v1, %v335_v3 }
  0x55   : > { %v236_v46 = vadd.f32 %v235_v42, %v234_v38 }
  0x57   : > { %v237_v50 = vrot.slane %v236_v46, 2 }
  0x59   : > { %v238_v54 = vadd.f32 %v237_v50, %v236_v46 }
  0x5b   : > { %v239_v58 = vrot.slane %v238_v54, 1 }
  0x5d   : > { %v240_v63 = vadd.f32 %v239_v58, %v238_v54 }
  0x5f   : > { %v241_v2 = vadd.f32 %v240_v63, %v170_v60 }
  0x61   : > { %243 = vst.msk [vmem:[#allocation2] sm:$0x1] %vm242_vm2, %v241_v2 }
  0x62   : > { %465 = shalt.err (!%p462_p12)
}
  0x63   : > { %430 = dma.vmem_to_hbm [thread:$0]  (%p437_p5), %s356_s17, 16, %s676_s1, [#allocation3]   ;;  %v339_v6 = vadd.f32 %v338_v4, %v337_v5  ;;  %v244_v12 = vld [vmem:[#allocation4] sm:$0x1] }
  0x64   : > { %s518_s22 = smov [#allocation4]  }
  0x65   : > { %v340_v7 = vrot.slane %v339_v6, 4  ;;  %s366_s23 = sshll.u32 %s518_s22, 4  ;;  %s367_s23 = int_to_ptr.vmem [resolvable:$true] %s366_s23 }
  0x66   : > { %s476_s24 = scalar_lea.vmem %s367_s23, 16  ;;  %s482_s25 = scalar_lea.vmem %s367_s23, 32 }
  0x67   : > { %v341_v8 = vadd.f32 %v340_v7, %v339_v6  ;;  %p477_p13 = scmp.ne.s32.totalorder %s367_s23, %s476_s24  ;;  %p483_p2 = scmp.lt.s32.totalorder %s367_s23, %s367_s23 }
  0x68   : > { %p484_p3 = scmp.lt.s32.totalorder %s482_s25, %s476_s24 }
  0x69   : > { %v342_v9 = vrot.slane %v341_v8, 2  ;;  %p478_p0 = pnand %p477_p13, %p437_p5 }
  0x6a   : > { %p485_p4 = por %p484_p3, %p483_p2 }
  0x6b   : > { %v343_v10 = vadd.f32 %v342_v9, %v341_v8  ;;  %p479_p1 = pneg %p478_p0 }
  0x6d   : > { %v344_v11 = vrot.slane %v343_v10, 1  ;;  %p486_p6 = pnand %p485_p4, %p479_p1 }
  0x6f   : > { %v345_v13 = vadd.f32 %v344_v11, %v343_v10 }
  0x71   : > { %v346_v14 = vadd.f32 %v345_v13, %v244_v12 }
  0x73   : > { %347 = vst.msk [vmem:[#allocation4] sm:$0x1] %vm242_vm2, %v346_v14 }
  0x74   : > { %489 = shalt.err (!%p486_p6)
}
  0x75   : > { %432 = dma.vmem_to_hbm [thread:$0]  (%p437_p5), %s367_s23, 16, %s677_s2, [#allocation5]  }
  0x76   : > { %505 = dma.done.wait (%p437_p5), [#allocation3], 16  }
  0x77   : > { %507 = vsyncadd (%p437_p5), [#allocation3], 4294967280 }
  0x78   : > { %509 = dma.done.wait (%p437_p5), [#allocation5], 16  }
  0x79   : > { %511 = vsyncadd (%p437_p5), [#allocation5], 4294967280 }
  0x7a PF: > { %s15_s9 = sadd.s32 1, %s514_s9  }
  0x7b   : > { %p12_p7 = scmp.ge.s32.totalorder %s15_s9, 4  }
  0x7d   :  { %14 = sbr.rel (!%p12_p7) target bundleno = 2 (0x2), region = 63 }
  0x82   :  { %383 = vsyncpa [#allocation3], 1 }
  0x83   :  { %385 = vsyncpa [#allocation3 + $0x1], 1 }
  0x84   :  { %386 = vsyncpa [#allocation5], 1 }

</bundles_post_ra>
